<compile_context>
chip_gen: v5e
topology: v5e:2x2
jax: 0.10.0
libtpu: 0.0.40
codegen_flags: <defaults>
</compile_context>

<pallas_src>
import functools

import jax
import jax.numpy as jnp
import numpy as np
from jax.experimental import pallas as pl
from jax.experimental.pallas import tpu as pltpu


def _estimator_kernel(x_ref, halo_ref, w1_ref, bias_ref, w2_ref, b2_ref, o_ref, *, wp):
    # x_ref:    (1, Cin, TILE)    bf16 main flat-position tile of the padded image
    # halo_ref: (1, Cin, HALO_W)  bf16 right halo (next HALO_W flat positions)
    # w1_ref:   (Cmid, 9*Cin)     bf16 BN-scale-folded conv3x3 weights (tap-major cols)
    # bias_ref: (Cmid, 1)         f32  folded conv-bias + BN beta
    # w2_ref:   (Cmid, 1)         f32  1x1 conv weights
    # b2_ref:   (1,)              f32  1x1 conv bias (SMEM scalar)
    # o_ref:    (1, 1, TILE)      f32  output tile (flat positions, stride Wp per row)
    tile = x_ref.shape[-1]
    x = jnp.concatenate([x_ref[0], halo_ref[0]], axis=-1)        # (Cin, TILE + HALO_W)

    # Stack the 9 lane-shifted taps along the contraction axis -> ONE MXU pass
    # (K = 9*Cin) instead of nine tiny K = Cin matmuls.
    taps = []
    for k in range(9):
        ky, kx = divmod(k, 3)
        shift = ky * wp + kx
        taps.append(x[:, shift:shift + tile])                    # (Cin, TILE)
    xs = jnp.concatenate(taps, axis=0)                           # (9*Cin, TILE)

    acc = jnp.dot(w1_ref[...], xs,
                  preferred_element_type=jnp.float32)            # (Cmid, TILE) f32

    # Folded bias (conv bias * bn_scale + bn beta) + ReLU, on the f32 accumulator.
    y = jnp.maximum(acc + bias_ref[...], 0.0)                    # (Cmid, TILE)

    # 1x1 conv -> 1 channel: VPU multiply + small sublane reduce.
    o = jnp.sum(y * w2_ref[...], axis=0, keepdims=True)          # (1, TILE)
    o_ref[0] = o + b2_ref[0]


def font_size_estimator_forward(feat_nchw, w1_hwio, bn_scale, bn_bias, w2, b2,
                                conv1_bias=None, *, tile_cols=2048):
    """feat_nchw: (N, Cin, H, W) float32 -> (N, 1, H, W) float32."""
    N, Cin, H, W = feat_nchw.shape
    Cmid = w1_hwio.shape[-1]
    Wp = W + 2

    if conv1_bias is None:
        conv1_bias = jnp.zeros((Cmid,), jnp.float32)

    # ---- fold eval-mode BN into the conv3x3: scale into the weights, bias folded ----
    w1_folded = w1_hwio.astype(jnp.float32) * bn_scale[None, None, None, :]
    # (Cmid, 9*Cin): column order is tap-major (k = ky*3+kx), then input channel.
    w1_stacked = jnp.transpose(w1_folded.reshape(9, Cin, Cmid), (2, 0, 1)) \
                    .reshape(Cmid, 9 * Cin).astype(jnp.bfloat16)
    bias_col = (bn_scale * conv1_bias + bn_bias).reshape(Cmid, 1).astype(jnp.float32)
    w2_col = w2.reshape(Cmid, 1).astype(jnp.float32)
    b2_s = b2.reshape(1).astype(jnp.float32)

    # ---- flat-position tiling (lane axis = h*Wp + w) ----
    l_valid = H * Wp                          # flat positions we must produce
    halo = 2 * Wp + 2                         # largest tap shift (ky=2, kx=2)
    halo_w = 128 * pl.cdiv(halo, 128)         # lane-aligned halo block width
    tile = 128 * max(1, tile_cols // 128)
    tile = min(tile, 128 * pl.cdiv(l_valid, 128))   # don't tile past the image
    n_tiles = pl.cdiv(l_valid, tile)
    if N * n_tiles < 2 and l_valid > 128:           # expose >=2 steps for v7x megacore
        tile = 128 * pl.cdiv(pl.cdiv(l_valid, 2), 128)
        n_tiles = pl.cdiv(l_valid, tile)
    l_total = n_tiles * tile + halo_w

    # ---- single host-side pad pass (bf16): W by (1,1), H by (1, rows to cover the
    #      conv halo AND the flat-position tail); then flatten (H, W) onto lanes ----
    rows_total = pl.cdiv(l_total, Wp)
    xpad = jnp.pad(feat_nchw.astype(jnp.bfloat16),
                   ((0, 0), (0, 0), (1, rows_total - H - 1), (1, 1)))
    xflat = xpad.reshape(N, Cin, rows_total * Wp)

    # Right-halo blocks gathered on the host (tiny: n_tiles*halo_w columns), so the
    # tile width is fully independent of halo_w / Wp.
    halo_idx = ((jnp.arange(n_tiles)[:, None] + 1) * tile
                + jnp.arange(halo_w)[None, :]).reshape(-1)
    xhalo = jnp.take(xflat, halo_idx, axis=2)        # (N, Cin, n_tiles*halo_w)

    # Right-sized VMEM budget: double-buffered blocks + in-kernel temporaries,
    # with 4x headroom, kept well under v7x's 64 MiB physical VMEM.
    per_step = (2 * 2 * Cin * (tile + halo_w)        # bf16 activation DMA buffers x2
                + 2 * 4 * tile                        # f32 output block x2
                + 2 * 9 * Cin * tile                  # stacked bf16 tap operand
                + 4 * Cmid * tile * 3                 # f32 acc / relu / 1x1 temporaries
                + 2 * 9 * Cin * Cmid + 4 * (2 * Cmid + 1))
    vmem_limit = int(min(32 * 2**20, max(16 * 2**20, 4 * per_step)))

    kernel = functools.partial(_estimator_kernel, wp=Wp)
    out_flat = pl.pallas_call(
        kernel,
        out_shape=jax.ShapeDtypeStruct((N, 1, n_tiles * tile), jnp.float32),
        grid_spec=pltpu.PrefetchScalarGridSpec(
            num_scalar_prefetch=0,
            grid=(N, n_tiles),
            in_specs=[
                # main activation tile (lane-dense flat positions)
                pl.BlockSpec((1, Cin, tile), lambda n, j: (n, 0, j)),
                # right halo of the same tile (pre-gathered, block j)
                pl.BlockSpec((1, Cin, halo_w), lambda n, j: (n, 0, j)),
                # weights / affine params (constant block index -> stay resident)
                pl.BlockSpec((Cmid, 9 * Cin), lambda n, j: (0, 0)),
                pl.BlockSpec((Cmid, 1), lambda n, j: (0, 0)),
                pl.BlockSpec((Cmid, 1), lambda n, j: (0, 0)),
                pl.BlockSpec(memory_space=pltpu.MemorySpace.SMEM),   # b2 scalar
            ],
            out_specs=pl.BlockSpec((1, 1, tile), lambda n, j: (n, 0, j)),
        ),
        compiler_params=pltpu.CompilerParams(
            dimension_semantics=("parallel", "parallel"),
            vmem_limit_bytes=vmem_limit,
        ),
    )(xflat, xhalo, w1_stacked, bias_col, w2_col, b2_s)

    # flat positions back to NCHW: p = h*Wp + w; drop pad columns (w >= W) and tail.
    out = out_flat[:, :, :l_valid].reshape(N, 1, H, Wp)[:, :, :, :W]
    return out


def _reference(feat_nchw, w1_hwio, bn_scale, bn_bias, w2, b2, conv1_bias=None):
    """Plain-JAX f32 reference (same math) for correctness checking."""
    Cmid = w1_hwio.shape[-1]
    if conv1_bias is None:
        conv1_bias = jnp.zeros((Cmid,), jnp.float32)
    x = jnp.transpose(feat_nchw, (0, 2, 3, 1))
    y = jax.lax.conv_general_dilated(
        x, w1_hwio, window_strides=(1, 1), padding="SAME",
        dimension_numbers=("NHWC", "HWIO", "NHWC"))
    y = (y + conv1_bias) * bn_scale + bn_bias
    y = jnp.maximum(y, 0.0)
    o = jnp.einsum("nhwc,co->nhwo", y, w2) + b2
    return jnp.transpose(o, (0, 3, 1, 2))


if __name__ == "__main__":
    N, Cin, H, W = 2, 4, 16, 16
    Cmid = 8  # bottleneck_channels

    key = jax.random.PRNGKey(0)
    k1, k2, kx = jax.random.split(key, 3)

    # Deterministic parameter init matching the module's initialize_weights():
    #   Conv2d weights: xavier_normal_, Conv2d biases: zero, BN: gamma=1, beta=0.
    std1 = (2.0 / (Cin * 9 + Cmid * 9)) ** 0.5             # xavier_normal for 3x3 conv
    w1 = std1 * jax.random.normal(k1, (3, 3, Cin, Cmid), jnp.float32)   # HWIO

    # BatchNorm2d applied in eval mode with default running stats
    # (running_mean=0, running_var=1, eps=1e-5), folded to scale/bias.
    # TODO(synk): training-mode BN (per-batch statistics) is not implemented.
    eps = 1e-5
    bn_scale = jnp.ones((Cmid,), jnp.float32) / jnp.sqrt(1.0 + eps)
    bn_bias = jnp.zeros((Cmid,), jnp.float32)

    std2 = (2.0 / (Cmid + 1)) ** 0.5                        # xavier_normal for 1x1 conv
    w2 = std2 * jax.random.normal(k2, (Cmid, 1), jnp.float32)
    b2 = jnp.zeros((1,), jnp.float32)                       # zero-init conv bias
    conv1_bias = jnp.zeros((Cmid,), jnp.float32)            # zero-init conv bias

    feat = jax.random.normal(kx, (N, Cin, H, W), jnp.float32)

    ref = _reference(feat, w1, bn_scale, bn_bias, w2, b2, conv1_bias)

    # bf16 activations/weights in the kernel -> loosened tolerance vs f32 reference.
    TOL = dict(rtol=3e-2, atol=3e-2)

    # Default tiling (single spatial tile at this small size, grid=(N, 1)).
    out = jax.block_until_ready(
        font_size_estimator_forward(feat, w1, bn_scale, bn_bias, w2, b2, conv1_bias))
    assert out.shape == (N, 1, H, W), out.shape
    np.testing.assert_allclose(np.asarray(out), np.asarray(ref), **TOL)

    # Small tiles to exercise the multi-tile (halo) spatial-grid path.
    out_tiled = jax.block_until_ready(
        font_size_estimator_forward(feat, w1, bn_scale, bn_bias, w2, b2, conv1_bias,
                                    tile_cols=128))
    np.testing.assert_allclose(np.asarray(out_tiled), np.asarray(ref), **TOL)

    print("KERNEL_OK")
</pallas_src>

<mosaic_0001>
module attributes {stable_mosaic.version = 11 : i64} {
  func.func @_estimator_kernel(%arg0: i32, %arg1: i32, %arg2: memref<1x4x384xbf16, #tpu.memory_space<vmem>>, %arg3: memref<1x4x128xbf16, #tpu.memory_space<vmem>>, %arg4: memref<8x36xbf16, #tpu.memory_space<vmem>>, %arg5: memref<8x1xf32, #tpu.memory_space<vmem>>, %arg6: memref<8x1xf32, #tpu.memory_space<vmem>>, %arg7: memref<1xf32, #tpu.memory_space<smem>>, %arg8: memref<1x1x384xf32, #tpu.memory_space<vmem>>) attributes {dimension_semantics = [#tpu.dimension_semantics<parallel>, #tpu.dimension_semantics<parallel>], iteration_bounds = array<i64: 2, 1>, scalar_prefetch = 0 : i64, scratch_operands = 0 : i64, tpu.core_type = #tpu.core_type<tc>, window_params = [{transform_indices = @transform_0, window_bounds = array<i64: 1, 4, 384>}, {transform_indices = @transform_1, window_bounds = array<i64: 1, 4, 128>}, {pipeline_mode = #tpu.pipeline_mode<synchronous>, transform_indices = @transform_2, window_bounds = array<i64: 8, 36>}, {pipeline_mode = #tpu.pipeline_mode<synchronous>, transform_indices = @transform_3, window_bounds = array<i64: 8, 1>}, {pipeline_mode = #tpu.pipeline_mode<synchronous>, transform_indices = @transform_4, window_bounds = array<i64: 8, 1>}, {transform_indices = @transform_5, window_bounds = array<i64: 1>}, {transform_indices = @transform_6, window_bounds = array<i64: 1, 1, 384>}]} {
    %c0 = arith.constant 0 : index
    %c0_0 = arith.constant 0 : index
    %c0_1 = arith.constant 0 : index
    %0 = vector.load %arg2[%c0, %c0_0, %c0_1] : memref<1x4x384xbf16, #tpu.memory_space<vmem>>, vector<1x4x384xbf16>
    %1 = vector.shape_cast %0 : vector<1x4x384xbf16> to vector<4x384xbf16>
    %c0_2 = arith.constant 0 : index
    %c0_3 = arith.constant 0 : index
    %c0_4 = arith.constant 0 : index
    %2 = vector.load %arg3[%c0_2, %c0_3, %c0_4] : memref<1x4x128xbf16, #tpu.memory_space<vmem>>, vector<1x4x128xbf16>
    %3 = vector.shape_cast %2 : vector<1x4x128xbf16> to vector<4x128xbf16>
    %4 = tpu.concatenate %1, %3 in 1 : vector<4x384xbf16>, vector<4x128xbf16> -> vector<4x512xbf16>
    %5 = vector.extract_strided_slice %4 {offsets = [0, 0], sizes = [4, 384], strides = [1, 1]} : vector<4x512xbf16> to vector<4x384xbf16>
    %6 = vector.extract_strided_slice %4 {offsets = [0, 1], sizes = [4, 384], strides = [1, 1]} : vector<4x512xbf16> to vector<4x384xbf16>
    %7 = vector.extract_strided_slice %4 {offsets = [0, 2], sizes = [4, 384], strides = [1, 1]} : vector<4x512xbf16> to vector<4x384xbf16>
    %8 = vector.extract_strided_slice %4 {offsets = [0, 18], sizes = [4, 384], strides = [1, 1]} : vector<4x512xbf16> to vector<4x384xbf16>
    %9 = vector.extract_strided_slice %4 {offsets = [0, 19], sizes = [4, 384], strides = [1, 1]} : vector<4x512xbf16> to vector<4x384xbf16>
    %10 = vector.extract_strided_slice %4 {offsets = [0, 20], sizes = [4, 384], strides = [1, 1]} : vector<4x512xbf16> to vector<4x384xbf16>
    %11 = vector.extract_strided_slice %4 {offsets = [0, 36], sizes = [4, 384], strides = [1, 1]} : vector<4x512xbf16> to vector<4x384xbf16>
    %12 = vector.extract_strided_slice %4 {offsets = [0, 37], sizes = [4, 384], strides = [1, 1]} : vector<4x512xbf16> to vector<4x384xbf16>
    %13 = vector.extract_strided_slice %4 {offsets = [0, 38], sizes = [4, 384], strides = [1, 1]} : vector<4x512xbf16> to vector<4x384xbf16>
    %14 = tpu.concatenate %5, %6, %7, %8, %9, %10, %11, %12, %13 in 0 : vector<4x384xbf16>, vector<4x384xbf16>, vector<4x384xbf16>, vector<4x384xbf16>, vector<4x384xbf16>, vector<4x384xbf16>, vector<4x384xbf16>, vector<4x384xbf16>, vector<4x384xbf16> -> vector<36x384xbf16>
    %c0_5 = arith.constant 0 : index
    %c0_6 = arith.constant 0 : index
    %15 = vector.load %arg4[%c0_5, %c0_6] : memref<8x36xbf16, #tpu.memory_space<vmem>>, vector<8x36xbf16>
    %cst = arith.constant dense<0.000000e+00> : vector<8x384xf32>
    %16 = tpu.matmul %15, %14, %cst {dimension_numbers = #tpu.dot_dimension_numbers<[1], [0], [0], [1], [0, 0, 1, 1], [], []>} : vector<8x36xbf16>, vector<36x384xbf16>, vector<8x384xf32> -> vector<8x384xf32>
    %c0_7 = arith.constant 0 : index
    %c0_8 = arith.constant 0 : index
    %17 = vector.load %arg5[%c0_7, %c0_8] : memref<8x1xf32, #tpu.memory_space<vmem>>, vector<8x1xf32>
    %18 = vector.broadcast %17 : vector<8x1xf32> to vector<8x384xf32>
    %19 = arith.addf %16, %18 : vector<8x384xf32>
    %cst_9 = arith.constant 0.000000e+00 : f32
    %20 = vector.broadcast %cst_9 : f32 to vector<8x384xf32>
    %21 = arith.maximumf %19, %20 : vector<8x384xf32>
    %c0_10 = arith.constant 0 : index
    %c0_11 = arith.constant 0 : index
    %22 = vector.load %arg6[%c0_10, %c0_11] : memref<8x1xf32, #tpu.memory_space<vmem>>, vector<8x1xf32>
    %23 = vector.broadcast %22 : vector<8x1xf32> to vector<8x384xf32>
    %24 = arith.mulf %21, %23 : vector<8x384xf32>
    %cst_12 = arith.constant dense<0.000000e+00> : vector<384xf32>
    %25 = vector.multi_reduction <add>, %24, %cst_12 [0] : vector<8x384xf32> to vector<384xf32>
    %26 = vector.shape_cast %25 : vector<384xf32> to vector<1x384xf32>
    %c0_13 = arith.constant 0 : index
    %27 = memref.load %arg7[%c0_13] : memref<1xf32, #tpu.memory_space<smem>>
    %28 = vector.broadcast %27 : f32 to vector<1x384xf32>
    %29 = arith.addf %26, %28 : vector<1x384xf32>
    %c0_14 = arith.constant 0 : index
    %c0_15 = arith.constant 0 : index
    %c0_16 = arith.constant 0 : index
    %30 = vector.load %arg8[%c0_14, %c0_15, %c0_16] : memref<1x1x384xf32, #tpu.memory_space<vmem>>, vector<1x1x384xf32>
    %31 = vector.shape_cast %30 : vector<1x1x384xf32> to vector<1x384xf32>
    %32 = vector.shape_cast %29 : vector<1x384xf32> to vector<1x1x384xf32>
    tpu.vector_store %arg8[%c0_14, %c0_15, %c0_16], %32 {strides = array<i32>} : memref<1x1x384xf32, #tpu.memory_space<vmem>>, vector<1x1x384xf32>,
    return
  }
  func.func @transform_0(%arg0: i32, %arg1: i32) -> (i32, i32, i32) {
    %c0_i32 = arith.constant 0 : i32
    %c0_i32_0 = arith.constant 0 : i32
    return %arg0, %c0_i32, %arg1 : i32, i32, i32
  }
  func.func @transform_1(%arg0: i32, %arg1: i32) -> (i32, i32, i32) {
    %c0_i32 = arith.constant 0 : i32
    %c0_i32_0 = arith.constant 0 : i32
    return %arg0, %c0_i32, %arg1 : i32, i32, i32
  }
  func.func @transform_2(%arg0: i32, %arg1: i32) -> (i32, i32) {
    %c0_i32 = arith.constant 0 : i32
    %c0_i32_0 = arith.constant 0 : i32
    %c0_i32_1 = arith.constant 0 : i32
    return %c0_i32, %c0_i32_0 : i32, i32
  }
  func.func @transform_3(%arg0: i32, %arg1: i32) -> (i32, i32) {
    %c0_i32 = arith.constant 0 : i32
    %c0_i32_0 = arith.constant 0 : i32
    %c0_i32_1 = arith.constant 0 : i32
    return %c0_i32, %c0_i32_0 : i32, i32
  }
  func.func @transform_4(%arg0: i32, %arg1: i32) -> (i32, i32) {
    %c0_i32 = arith.constant 0 : i32
    %c0_i32_0 = arith.constant 0 : i32
    %c0_i32_1 = arith.constant 0 : i32
    return %c0_i32, %c0_i32_0 : i32, i32
  }
  func.func @transform_5(%arg0: i32, %arg1: i32) -> i32 {
    %c0_i32 = arith.constant 0 : i32
    %c0_i32_0 = arith.constant 0 : i32
    return %c0_i32 : i32
  }
  func.func @transform_6(%arg0: i32, %arg1: i32) -> (i32, i32, i32) {
    %c0_i32 = arith.constant 0 : i32
    %c0_i32_0 = arith.constant 0 : i32
    return %arg0, %c0_i32, %arg1 : i32, i32, i32
  }
}

</mosaic_0001>

<bundles_post_ra>
// kernel: tpu_custom_call.1
= control target key start
LH: loop header
LB: loop body
LE: loop exit
PB: predicated region body
PF: predicated region fallthrough
CT: control target
= control target key end

     0   :  { %s1205_s0 = inlined_call_operand.hbm [shape: bf16[2,4,522], index: 0, kind: input, shape index: {}]   ;;  %s1206_s1 = inlined_call_operand.vmem [shape: bf16[2,4,128], index: 1, kind: input, shape index: {}]   ;;  %s1207_s2 = inlined_call_operand.vmem [shape: bf16[8,36], index: 2, kind: input, shape index: {}]   ;;  %s1208_s3 = inlined_call_operand.vmem [shape: f32[8,1], index: 3, kind: input, shape index: {}]   ;;  %s1209_s4 = inlined_call_operand.vmem [shape: f32[8,1], index: 4, kind: input, shape index: {}]   ;;  %s1210_s5 = inlined_call_operand.<no memory space> [shape: f32[1], index: 5, kind: input, shape index: {}]   ;;  %s1211_s6 = inlined_call_operand.hbm [shape: f32[2,1,384], index: 6, kind: output, shape index: {}]  }
   0x1   :  { %11 = sst [smem:[#allocation2]] %s1210_s5 }
   0x2   :  { %12 = vsyncpa [#allocation4], 0 }
   0x3   :  { %14 = vsyncpa [#allocation4 + $0x1], 0 }
   0x4   :  { %15 = vsyncpa [#allocation5], 0 }
   0x5   :  { %17 = vsyncpa [#allocation5 + $0x1], 0  ;;  %s973_s23 = smov 0   ;;  %s975_s24 = smov 0  }
   0x6   :  { %s977_s25 = smov 0   ;;  %s979_s26 = smov 0  }
   0x7   :  { %s981_s27 = smov 0   ;;  %s983_s28 = smov 0  }
   0x8 LB: > { %s722_s5 = sadd.s32 4294967295, %s924_s28   ;;  %s723_s29 = sadd.s32 4294967294, %s924_s28   ;;  %s924_s28 = sphi %s983_s28, %s23_s28   ;;  %s920_s27 = sphi %s981_s27, %s1220_s27   ;;  %s916_s26 = sphi %s979_s26, %s1219_s26   ;;  %s912_s25 = sphi %s977_s25, %s1218_s25   ;;  %s908_s24 = sphi %s975_s24, %s1217_s24   ;;  %s904_s23 = sphi %s973_s23, %s1216_s23  }
   0x9   : > { %s35_s30 = sadd.s32 1, %s920_s27  ;;  %s44_s7 = sadd.s32 1, %s912_s25 }
   0xa   : > { %p37_p0 = scmp.ge.s32.totalorder %s35_s30, 2  ;;  %p51_p1 = scmp.ne.s32.totalorder %s912_s25, %s908_s24 }
   0xb   : > { %p52_p2 = scmp.eq.s32.totalorder %s924_s28, 0  ;;  %p57_p3 = scmp.ne.s32.totalorder %s908_s24, %s904_s23 }
   0xc   : > { %s1222_s30 = smov (%p37_p0, %s35_s30), 0  ;;  %p58_p5 = scmp.eq.s32.totalorder %s722_s5, 0 }
   0xd   : > { %p1014_p4 = por %p52_p2, %p51_p1  ;;  %s39_s9 = ssub.s32 %s920_s27, %s1222_s30 }
   0xe   : > { %p195_p6 = scmp.eq.s32.totalorder %s722_s5, 1  ;;  %p42_p7 = scmp.eq.s32.totalorder %s39_s9, 0 }
   0xf   : > { %p1020_p8 = por %p58_p5, %p57_p3  ;;  %p201_p10 = scmp.eq.s32.totalorder %s723_s29, 1 }
  0x10   : > { %p1024_p9 = por %p195_p6, %p51_p1  ;;  %p725_p12 = scmp.ge.s32.totalorder %s924_s28, 2 }
  0x11   : > { %s1029_s12 = scalar_select %p42_p7, %s912_s25, %s44_s7  }
  0x12   : > { %p1031_p11 = por %p201_p10, %p57_p3  ;;  %p751_p13 = scmp.lt.s32.totalorder %s924_s28, 2 }
  0x13   : > { %s233_s14 = sand.u32 1, %s912_s25   ;;  %s735_s16 = smul.u32 10, %s920_s27 }
  0x14   : > { %s734_s15 = smul.u32 6, %s233_s14  ;;  %p744_p0 = pnand %p751_p13, %p1014_p4 }
  0x15   : > { %p727_p2 = scmp.ge.s32.totalorder %s924_s28, 1  ;;  %s250_s19 = scalar_lea.hbm %s1205_s0, %s735_s16 }
  0x16   : > { %s237_s20 = scalar_lea.vmem [#allocation3], %s734_s15  ;;  %s253_s22 = sshll.u32 %s250_s19, 4  ;;  %s254_s22 = int_to_ptr.hbm [resolvable:$true] %s253_s22 }
  0x17   : > { %s255_s21 = sshll.u32 %s237_s20, 4  ;;  %s234_s5 = scalar_lea.sflag [#allocation4], %s233_s14  ;;  %s256_s21 = int_to_ptr.vmem [resolvable:$true] %s255_s21 }
  0x18   : > { %746 = dma.hbm_to_vmem [thread:$0]  (!%p744_p0), %s254_s22, 96, %s256_s21, %s234_s5  }
  0x19   : > { %p270_p1 = scmp.lt.s32.totalorder %s924_s28, 3 }
  0x1b   : > { %p271_p3 = pnand %p727_p2, %p270_p1 }
  0x1c   : > { %s1047_s29 = sand.u32 (!%p271_p3), 1, %s908_s24  }
  0x1d   : > { %274 = sbr.rel (%p271_p3) target bundleno = 394 (0x18a), region = 44  ;;  %s277_s8 = scalar_lea.sflag (!%p271_p3), [#allocation4], %s1047_s29 }
  0x1e   : > { %s736_s7 = smul.u32 (!%p271_p3), 6, %s1047_s29 }
  0x20   : > { %s280_s9 = scalar_lea.vmem (!%p271_p3), [#allocation3], %s736_s7 }
  0x22   : > { %895 = dma.done.wait (%p1020_p8), %s277_s8, 96  }
  0x23   : > { %897 = vsyncadd (%p1020_p8), %s277_s8, 4294967200  ;;  %p322_p4 = scmp.lt.s32.totalorder %s916_s26, 1  ;;  %v331_v0 = vld [vmem:[%s280_s9] sm:$0x3f]  ;;  %s926_s19 = smov 109   ;;  %vm446_vm0 = vcmask 736256  }
  0x24   : > { %334 = vst [vmem:[#allocation1] ss:$4 sm:$0xff] %v331_v0  ;;  %s927_s20 = smov 90   ;;  %s928_s10 = smov 108   ;;  %vm450_vm1 = vcmask 1041408   ;;  %vm398_vm2 = vcmask 891904  }
  0x25   : > { %s323_s14 = scalar_select %p322_p4, %s916_s26, 1  ;;  %vm410_vm3 = vcmask 883712   ;;  %vm422_vm4 = vcmask 752640   ;;  %vm434_vm5 = vcmask 744448   ;;  %vm457_vm6 = vcmask 1043456  }
  0x26   : > { %s929_s21 = smov 92   ;;  %s930_s22 = smov 91   ;;  %vm464_vm7 = vcmask 1045504   ;;  %vm354_vm8 = vcmask 1039360   ;;  %vm370_vm9 = vcmask 1031168   ;;  %vm386_vm10 = vcmask 900096  }
  0x27   : > { %s728_s15 = sshll.u32 %s323_s14, 1  ;;  %s931_s5 = smov 127   ;;  %vm505_vm11 = vcmask 293888   ;;  %vm597_vm12 = vcmask 1040384  }
  0x28   : > { %s328_s18 = scalar_lea.vmem %s1206_s1, %s728_s15  ;;  %s932_s7 = smov 126  }
  0x29   : > { %v332_v1 = vld [vmem:[%s328_s18] sm:$0x3]  ;;  %s933_s8 = smov 110   ;;  %s862_s18 = scalar_lea.hbm %s1211_s6, 6 }
  0x2a   : > { %396 = vrot.lane.b32.xlu1 %v332_v1, %s926_s19  ;;  %444 = vrot.lane.b32.xlu0 %v332_v1, %s927_s20  ;;  %v345_v2 = vrot.slane %v332_v1, 6  ;;  %v361_v3 = vrot.slane %v332_v1, 4  ;;  %v377_v8 = vrot.slane %v332_v1, 2  ;;  %v498_v1 = vld [vmem:[%s1207_s2] sm:$0xf] }
  0x2b   : > { %v1063_v4 = vld.sshfl [vmem:[#allocation1 + $0x10] sm:$0xff pattern:$0x73625140]  ;;  %v1076_v9 = vld.sshfl [vmem:[#allocation1 + $0x8] sm:$0xff pattern:$0x73625140] }
  0x2c   : > { %408 = vrot.lane.b32.xlu2 %v345_v2, %s928_s10  ;;  %v344_v5 = vrot.slane %v1063_v4, 6  ;;  %v360_v6 = vrot.slane %v1063_v4, 4  ;;  %v376_v7 = vrot.slane %v1063_v4, 2  ;;  %v343_v10 = vrot.slane %v1076_v9, 6 }
  0x2d   : > { %v1082_v11 = vld.sshfl [vmem:[#allocation1] sm:$0xff pattern:$0x73625140]  ;;  %v359_v12 = vrot.slane %v1076_v9, 4  ;;  %v375_v14 = vrot.slane %v1076_v9, 2 }
  0x2e   : > { %v342_v13 = vrot.slane %v1082_v11, 6  ;;  %v358_v15 = vrot.slane %v1082_v11, 4  ;;  %v374_v16 = vrot.slane %v1082_v11, 2 }
  0x32   : > { %420 = vrot.lane.b32.xlu1 %v361_v3, %s929_s21  ;;  %442 = vrot.lane.b32.xlu0 %v1063_v4, %s927_s20 }
  0x34   : > { %406 = vrot.lane.b32.xlu2 %v344_v5, %s928_s10 }
  0x3a   : > { %394 = vrot.lane.b32.xlu1 %v1063_v4, %s926_s19  ;;  %418 = vrot.lane.b32.xlu0 %v360_v6, %s929_s21 }
  0x3c   : > { %430 = vrot.lane.b32.xlu2 %v376_v7, %s930_s22 }
  0x42   : > { %432 = vrot.lane.b32.xlu0 %v377_v8, %s930_s22  ;;  %440 = vrot.lane.b32.xlu1 %v1076_v9, %s927_s20 }
  0x44   : > { %350 = vrot.lane.b32.xlu2 %v344_v5, %s931_s5 }
  0x4a   : > { %352 = vrot.lane.b32.xlu0 %v345_v2, %s931_s5  ;;  %366 = vrot.lane.b32.xlu1 %v360_v6, %s932_s7  ;;  %v560_v2 = vld [vmem:[%s1209_s4] sm:$0xff]  ;;  %v934_v6 = vmov 0  }
  0x4b   : > { %811 = vset.pattern.permute.xlu0 %v934_v6  ;;  %810 = vset.pattern.permute.xlu2 %v934_v6 }
  0x4c   : > { %368 = vrot.lane.b32.xlu2 %v361_v3, %s932_s7  ;;  %v499_v3 = vld [vmem:[%s1208_s3] sm:$0xff] }
  0x52   : > { %392 = vrot.lane.b32.xlu0 %v1076_v9, %s926_s19  ;;  %404 = vrot.lane.b32.xlu1 %v343_v10, %s928_s10 }
  0x54   : > { %438 = vrot.lane.b32.xlu2 %v1082_v11, %s927_s20  ;;  %s737_s20 = smul.u32 3, %s1047_s29 }
  0x5a   : > { %382 = vrot.lane.b32.xlu0 %v376_v7, %s933_s8  ;;  %384 = vrot.lane.b32.xlu1 %v377_v8, %s933_s8 }
  0x5c   : > { %416 = vrot.lane.b32.xlu2 %v359_v12, %s929_s21 }
  0x62   : > { %390 = vrot.lane.b32.xlu0 %v1082_v11, %s926_s19  ;;  %402 = vrot.lane.b32.xlu1 %v342_v13, %s928_s10  ;;  %s587_s19 = sld [smem:[#allocation2]]  ;;  %s738_s10 = smul.u32 3, %s916_s26 }
  0x63   : > { %s607_s26 = scalar_lea.sflag [#allocation5], %s1047_s29 }
  0x64   : > { %428 = vrot.lane.b32.xlu2 %v375_v14, %s930_s22 }
  0x6a   : > { %414 = vrot.lane.b32.xlu0 %v358_v15, %s929_s21  ;;  %348 = vrot.lane.b32.xlu1 %v343_v10, %s931_s5 }
  0x6c   : > { %426 = vrot.lane.b32.xlu2 %v374_v16, %s930_s22 }
  0x72   : > { %364 = vrot.lane.b32.xlu0 %v359_v12, %s932_s7  ;;  %346 = vrot.lane.b32.xlu1 %v342_v13, %s931_s5  ;;  %s619_s5 = scalar_lea.hbm %s1211_s6, %s738_s10 }
  0x73   : > { %s623_s9 = sshll.u32 %s619_s5, 4  ;;  %s624_s9 = int_to_ptr.hbm [resolvable:$true] %s623_s9 }
  0x74   : > { %380 = vrot.lane.b32.xlu2 %v375_v14, %s933_s8  ;;  %s856_s14 = sshra.s32 %s624_s9, 4  ;;  %s857_s14 = int_to_ptr.hbm [resolvable:$true] %s856_s14 }
  0x75   : > { %s858_s15 = scalar_lea.hbm %s857_s14, 3  ;;  %p863_p8 = scmp.lt.s32.totalorder %s857_s14, %s1211_s6 }
  0x76   : > { %p859_p5 = scmp.ne.s32.totalorder %s857_s14, %s858_s15  ;;  %p864_p10 = scmp.lt.s32.totalorder %s862_s18, %s858_s15 }
  0x78   : > { %p860_p6 = pnand %p859_p5, %p1024_p9  ;;  %p865_p13 = por %p864_p10, %p863_p8 }
  0x7a   : > { %362 = vrot.lane.b32.xlu0 %v358_v15, %s932_s7  ;;  %378 = vrot.lane.b32.xlu1 %v374_v16, %s933_s8  ;;  %s316_s7 = scalar_lea.vmem [#allocation6], %s737_s20  ;;  %p861_p7 = pneg %p860_p6 }
  0x7b   : > { %s621_s8 = sshll.u32 %s316_s7, 4  ;;  %s622_s8 = int_to_ptr.vmem [resolvable:$true] %s621_s8 }
  0x7c   : > { %502 = vperm.xlu2 %810, %v499_v3   ;;  %p866_p0 = pnand %p865_p13, %p861_p7 }
  0x82   : > { %563 = vperm.xlu0 %811, %v560_v2  }
  0x86   : > { %v409_v17 = vpop.permute.xlu2 %408 }
  0x8e   : > { %v407_v18 = vpop.permute.xlu2 %406 }
  0x8f   : > { %v413_v32 = vsel %vm410_vm3, %v407_v18, %v409_v17 }
  0x96   : > { %v431_v19 = vpop.permute.xlu2 %430 }
  0x9c   : > { %v397_v20 = vpop.permute.xlu1 %396  ;;  %v445_v21 = vpop.permute.xlu0 %444 }
  0x9e   : > { %v1101_v22 = vpop.permute.xlu2 %350 }
  0xa4   : > { %v421_v23 = vpop.permute.xlu1 %420  ;;  %v443_v24 = vpop.permute.xlu0 %442 }
  0xa5   : > { %v449_v25 = vsel %vm446_vm0, %v443_v24, %v445_v21 }
  0xa6   : > { %v369_v26 = vpop.permute.xlu2 %368  ;;  %v516_v27 = vsel %vm450_vm1, %v449_v25, 0 }
  0xa7   : > { %549 = vmatpush.bf16.msra.mxu2 %v516_v27 }
  0xac   : > { %v395_v28 = vpop.permute.xlu1 %394  ;;  %v419_v29 = vpop.permute.xlu0 %418 }
  0xad   : > { %v401_v30 = vsel %vm398_vm2, %v395_v28, %v397_v20  ;;  %v425_v34 = vsel %vm422_vm4, %v419_v29, %v421_v23 }
  0xae   : > { %v439_v31 = vpop.permute.xlu2 %438  ;;  %v482_v33 = vsel %vm450_vm1, %v401_v30, %v413_v32 }
  0xaf   : > { %v488_v39 = vsel %vm457_vm6, %v482_v33, %v425_v34 }
  0xb4   : > { %v433_v35 = vpop.permute.xlu0 %432  ;;  %v441_v36 = vpop.permute.xlu1 %440 }
  0xb5   : > { %v437_v37 = vsel %vm434_vm5, %v431_v19, %v433_v35  ;;  %v448_v38 = vsel %vm446_vm0, %v441_v36, %v443_v24  ;;  %v447_v40 = vsel %vm446_vm0, %v439_v31, %v441_v36 }
  0xb6   : > { %v513_v41 = vsel %vm450_vm1, %v448_v38, 0  ;;  %v496_v42 = vsel %vm464_vm7, %v488_v39, %v437_v37  ;;  %v510_v43 = vsel %vm450_vm1, %v447_v40, 0  ;;  %v417_v44 = vpop.permute.xlu2 %416 }
  0xb7   : > { %536 = vmatpush.bf16.msra.mxu1 %v513_v41  ;;  %550 = vmatpush.bf16.msra.mxu2 %v496_v42  ;;  %v424_v52 = vsel %vm422_vm4, %v417_v44, %v419_v29 }
  0xb8   : > { %523 = vmatpush.bf16.msra.mxu0 %v510_v43 }
  0xbc   : > { %v353_v45 = vpop.permute.xlu0 %352  ;;  %v367_v46 = vpop.permute.xlu1 %366 }
  0xbd   : > { %v357_v54 = vsel %vm354_vm8, %v1101_v22, %v353_v45  ;;  %v373_v59 = vsel %vm370_vm9, %v367_v46, %v369_v26 }
  0xbe   : > { %v429_v47 = vpop.permute.xlu2 %428  ;;  %v456_v58 = vsel %vm450_vm1, %v1063_v4, %v357_v54 }
  0xbf   : > { %v436_v55 = vsel %vm434_vm5, %v429_v47, %v431_v19  ;;  %v463_v63 = vsel %vm457_vm6, %v456_v58, %v373_v59 }
  0xc4   : > { %v393_v48 = vpop.permute.xlu0 %392  ;;  %v405_v49 = vpop.permute.xlu1 %404 }
  0xc5   : > { %v400_v50 = vsel %vm398_vm2, %v393_v48, %v395_v28  ;;  %v412_v51 = vsel %vm410_vm3, %v405_v49, %v407_v18 }
  0xc6   : > { %v479_v53 = vsel %vm450_vm1, %v400_v50, %v412_v51  ;;  %v427_v7 = vpop.permute.xlu2 %426 }
  0xc7   : > { %v486_v56 = vsel %vm457_vm6, %v479_v53, %v424_v52  ;;  %v435_v16 = vsel %vm434_vm5, %v427_v7, %v429_v47  ;;  %v601_v7 = vlaneseq }
  0xc8   : > { %v493_v57 = vsel %vm464_vm7, %v486_v56, %v436_v55 }
  0xc9   : > { %537 = vmatpush.bf16.msra.mxu1 %v493_v57  ;;  %vm603_vm13 = vcmp.lt.s32.totalorder %v601_v7, 384 }
  0xcc   : > { %v383_v60 = vpop.permute.xlu0 %382  ;;  %v385_v61 = vpop.permute.xlu1 %384 }
  0xcd   : > { %v389_v62 = vsel %vm386_vm10, %v383_v60, %v385_v61 }
  0xce   : > { %v472_v0 = vsel %vm464_vm7, %v463_v63, %v389_v62  ;;  %v381_v20 = vpop.permute.xlu2 %380 }
  0xcf   : > { %551 = vmatpush.bf16.msra.mxu2 %v472_v0  ;;  %v388_v26 = vsel %vm386_vm10, %v381_v20, %v383_v60 }
  0xd2   : > { %731 = vmatmul.msk.bf16.vlgmr.msra.gmra.mxu2 %vm505_vm11, %v498_v1 }
  0xd4   : > { %v391_v4 = vpop.permute.xlu0 %390  ;;  %v403_v5 = vpop.permute.xlu1 %402 }
  0xd5   : > { %v399_v8 = vsel %vm398_vm2, %v391_v4, %v393_v48  ;;  %v411_v10 = vsel %vm410_vm3, %v403_v5, %v405_v49 }
  0xd6   : > { %v476_v14 = vsel %vm450_vm1, %v399_v8, %v411_v10  ;;  %v503_v36 = vpop.permute.xlu2 %502 }
  0xdc   : > { %v415_v12 = vpop.permute.xlu0 %414  ;;  %v349_v13 = vpop.permute.xlu1 %348 }
  0xdd   : > { %v423_v15 = vsel %vm422_vm4, %v415_v12, %v417_v44  ;;  %v356_v19 = vsel %vm354_vm8, %v349_v13, %v1101_v22 }
  0xde   : > { %v484_v17 = vsel %vm457_vm6, %v476_v14, %v423_v15  ;;  %v454_v24 = vsel %vm450_vm1, %v1076_v9, %v356_v19 }
  0xdf   : > { %v490_v18 = vsel %vm464_vm7, %v484_v17, %v435_v16 }
  0xe0   : > { %524 = vmatpush.bf16.msra.mxu0 %v490_v18 }
  0xe4   : > { %v365_v21 = vpop.permute.xlu0 %364  ;;  %v347_v23 = vpop.permute.xlu1 %346 }
  0xe5   : > { %v372_v25 = vsel %vm370_vm9, %v365_v21, %v367_v46  ;;  %v355_v29 = vsel %vm354_vm8, %v347_v23, %v349_v13 }
  0xe6   : > { %v461_v27 = vsel %vm457_vm6, %v454_v24, %v372_v25  ;;  %v452_v31 = vsel %vm450_vm1, %v1082_v11, %v355_v29 }
  0xe7   : > { %v469_v28 = vsel %vm464_vm7, %v461_v27, %v388_v26 }
  0xe8   : > { %538 = vmatpush.bf16.msra.mxu1 %v469_v28 }
  0xeb   : > { %730 = vmatmul.msk.bf16.vlgmr.msra.gmra.mxu1 %vm505_vm11, %v498_v1 }
  0xec   : > { %v363_v22 = vpop.permute.xlu0 %362  ;;  %v379_v30 = vpop.permute.xlu1 %378 }
  0xed   : > { %v371_v9 = vsel %vm370_vm9, %v363_v22, %v365_v21  ;;  %v387_v32 = vsel %vm386_vm10, %v379_v30, %v381_v20 }
  0xee   : > { %v459_v33 = vsel %vm457_vm6, %v452_v31, %v371_v9 }
  0xef   : > { %v466_v34 = vsel %vm464_vm7, %v459_v33, %v387_v32 }
  0xf0   : > { %525 = vmatpush.bf16.msra.mxu0 %v466_v34 }
  0xf3   : > { %729 = vmatmul.msk.bf16.vlgmr.msra.gmra.mxu0 %vm505_vm11, %v498_v1  ;;  %v588_v1 = vstv %s587_s19 }
  0xf4   : > { %v564_v40 = vpop.permute.xlu0 %563 }
 0x155   : > { %v553_v35 = vpop.f32.mrf.mxu2 }
 0x156   : > { %v554_v37 = vadd.f32 %v553_v35, %v503_v36 }
 0x158   : > { %v559_v39 = vmax.f32 %v554_v37, 0.0 }
 0x15a   : > { %v568_v41 = vmul.f32 %v564_v40, %v559_v39 }
 0x15c   : > { %v581_v11 = vrot.slane %v568_v41, 4 }
 0x15d   : > { %v555_v38 = vpop.f32.mrf.mxu2 }
 0x15e   : > { %v582_v45 = vadd.f32 %v581_v11, %v568_v41 }
 0x160   : > { %v583_v48 = vrot.slane %v582_v45, 2 }
 0x162   : > { %v584_v55 = vadd.f32 %v583_v48, %v582_v45 }
 0x164   : > { %v585_v60 = vrot.slane %v584_v55, 1 }
 0x166   : > { %v586_v2 = vadd.f32 %v585_v60, %v584_v55 }
 0x168   : > { %v540_v42 = vpop.f32.mrf.mxu1  ;;  %v591_v6 = vadd.f32 %v588_v1, %v586_v2 }
 0x169   : > { %v541_v43 = vadd.f32 %v540_v42, %v503_v36 }
 0x16a   : > { %v596_v13 = vrot.slane %v591_v6, 6 }
 0x16b   : > { %v558_v44 = vmax.f32 %v541_v43, 0.0 }
 0x16d   : > { %v567_v46 = vmul.f32 %v564_v40, %v558_v44 }
 0x16f   : > { %v575_v47 = vrot.slane %v567_v46, 4 }
 0x170   : > { %v527_v49 = vpop.f32.mrf.mxu0  ;;  %v542_v50 = vpop.f32.mrf.mxu1 }
 0x171   : > { %v576_v51 = vadd.f32 %v575_v47, %v567_v46  ;;  %v528_v52 = vadd.f32 %v527_v49, %v503_v36 }
 0x173   : > { %v577_v53 = vrot.slane %v576_v51, 2  ;;  %v557_v54 = vmax.f32 %v528_v52, 0.0 }
 0x175   : > { %v578_v56 = vadd.f32 %v577_v53, %v576_v51  ;;  %v566_v57 = vmul.f32 %v564_v40, %v557_v54 }
 0x177   : > { %v579_v58 = vrot.slane %v578_v56, 1  ;;  %v569_v59 = vrot.slane %v566_v57, 4 }
 0x178   : > { %v529_v61 = vpop.f32.mrf.mxu0 }
 0x179   : > { %v570_v62 = vadd.f32 %v569_v59, %v566_v57  ;;  %v580_v63 = vadd.f32 %v579_v58, %v578_v56 }
 0x17b   : > { %v571_v0 = vrot.slane %v570_v62, 2  ;;  %v590_v4 = vadd.f32 %v588_v1, %v580_v63 }
 0x17d   : > { %v572_v3 = vadd.f32 %v571_v0, %v570_v62  ;;  %v595_v10 = vrot.slane %v590_v4, 7 }
 0x17f   : > { %v573_v5 = vrot.slane %v572_v3, 1 }
 0x181   : > { %v574_v8 = vadd.f32 %v573_v5, %v572_v3 }
 0x183   : > { %v589_v12 = vadd.f32 %v588_v1, %v574_v8 }
 0x185   : > { %v598_v14 = vsel %vm597_vm12, %v589_v12, %v595_v10 }
 0x186   : > { %v599_v15 = vsel %vm450_vm1, %v598_v14, %v596_v13 }
 0x187   : > { %605 = vst.msk [vmem:[%s316_s7] sm:$0x7] %vm603_vm13, %v599_v15 }
 0x188   : > { %869 = shalt.err (!%p866_p0)
}
 0x189   : > { %741 = dma.vmem_to_hbm [thread:$0]  (%p1024_p9), %s622_s8, 48, %s624_s9, %s607_s26  }
 0x18a PF: > { %s635_s29 = sand.u32 1, %s904_s23   ;;  %p748_p2 = pnand %p725_p12, %p1031_p11 }
 0x18b   : > { %s636_s10 = scalar_lea.sflag [#allocation5], %s635_s29 }
 0x18c   : > { %p749_p1 = pneg %p748_p2 }
 0x18e   : > { %899 = dma.done.wait (%p749_p1), %s636_s10, 48  }
 0x18f   : > { %901 = vsyncadd (%p749_p1), %s636_s10, 4294967248  ;;  %s23_s28 = sadd.s32 1, %s924_s28   ;;  %s1216_s23 = smov %s908_s24 }
 0x190   : > { %p20_p3 = scmp.ge.s32.totalorder %s23_s28, 4   ;;  %s1217_s24 = smov %s912_s25 }
 0x191   : > { %s1218_s25 = smov %s1029_s12  ;;  %s1219_s26 = smov %s920_s27 }
 0x192   : > { %s1220_s27 = smov %s1222_s30  ;;  %22 = sbr.rel (!%p20_p3) target bundleno = 8 (0x8), region = 92 }
 0x197   :  { %642 = vsyncpa [#allocation4], 1 }
 0x198   :  { %644 = vsyncpa [#allocation4 + $0x1], 1 }
 0x199   :  { %645 = vsyncpa [#allocation5], 1 }
 0x19a   :  { %647 = vsyncpa [#allocation5 + $0x1], 1 }

</bundles_post_ra>
